<compile_context>
chip_gen: v6e
topology: v6e:2x2x1
jax: 0.10.0
libtpu: 0.0.40
codegen_flags: <defaults>
</compile_context>

<pallas_src>
import functools

import jax
import jax.numpy as jnp
from jax import lax
from jax.experimental import pallas as pl
from jax.experimental.pallas import tpu as pltpu


_EPS = 1e-12      # matches torch.nn.functional.normalize(eps=1e-12)
_NEG_BIG = -1e30  # finite "-inf" sentinel (safe in f32 exp/max arithmetic)


# --------------------------------------------------------------------------
# Small helpers
# --------------------------------------------------------------------------
def _l2_normalize(x):
    """Row-wise L2 normalize in f32: x / max(||x||, 1e-12), via rsqrt."""
    x = x.astype(jnp.float32)
    ss = jnp.sum(x * x, axis=-1, keepdims=True)
    return x * lax.rsqrt(jnp.maximum(ss, _EPS * _EPS))


def _round_up(x, m):
    return ((x + m - 1) // m) * m


def _vmem_limit_bytes():
    """Per-generation scoped-VMEM limit (v7x only has 64 MiB per TensorCore)."""
    phys = 64 * 1024 * 1024  # conservative fallback = smallest (v7x)
    try:
        info = pltpu.get_tpu_info()
        phys = int(getattr(info, "vmem_capacity_bytes", phys))
    except Exception:
        pass
    return min(int(phys * 3 // 4), 96 * 1024 * 1024)


def _pick_tiles(n, m, d_pad, budget_bytes):
    """Pick (q_tile, kv_tile).  Keys HBM traffic is (N/q_tile)*M*D*2B, so keep
    q_tile as large as VMEM allows; kv_tile is the MXU N-dim / lane dim of the
    score tile, so keep it a full multiple of 128 (never below 128)."""
    if n <= 128:
        q_tile = _round_up(max(n, 1), 16)          # 16-align for bf16 sublane packing
    else:
        q_tile = min(512, _round_up(n, 128))
    kv_tile = min(512, _round_up(max(m, 1), 128))

    def usage(qt, kt):
        q_stream = 2 * 4 * qt * d_pad              # f32 q block, double-buffered
        p_stream = 2 * 4 * qt * d_pad              # f32 p block, double-buffered
        kv_stream = 2 * 2 * kt * d_pad             # bf16 keys, double-buffered
        bias_stream = 2 * 4 * kt                   # (1, kv_tile) f32 bias
        out_stream = 2 * 4 * qt                    # (q_tile, 1) f32 output
        scratch = 2 * qt * d_pad + 3 * 4 * qt      # bf16 qs + 3x f32 (qt,1)
        live = 3 * 4 * qt * kt                     # s / exp(s-m) / reduction temps
        return (q_stream + p_stream + kv_stream + bias_stream
                + out_stream + scratch + live)

    # Shrink kv first (keeps q_tile large -> fewer key re-streams), q last.
    while usage(q_tile, kv_tile) > budget_bytes and kv_tile > 128:
        kv_tile = max(128, _round_up(kv_tile // 2, 128))
    while usage(q_tile, kv_tile) > budget_bytes and q_tile > 128:
        q_tile = max(128, _round_up(q_tile // 2, 128))

    # v7x megacore: ensure >= 2 q-tiles when N is big enough to split
    # (harmless on single-TC v5e/v6e).
    if n > 256:
        while _round_up(n, q_tile) // q_tile < 2 and q_tile > 128:
            q_tile = max(128, _round_up(q_tile // 2, 128))
    return q_tile, kv_tile


# --------------------------------------------------------------------------
# Kernel: flash-style online-LSE InfoNCE.
#   fold_positive=True  -> explicit negatives: positive logit folded into LSE
#                          init (m=pos, l=1); kv stream contains only negatives.
#   fold_positive=False -> cross-batch negatives: the diagonal logit is part of
#                          the streamed logits; subtract the f32 row-dot at end.
# --------------------------------------------------------------------------
def _infonce_kernel(q_ref, p_ref, kv_ref, bias_ref, o_ref,
                    qs_ref, pos_ref, m_ref, l_ref,
                    *, fold_positive, padded):
    j = pl.program_id(1)

    @pl.when(j == 0)
    def _init():
        q = q_ref[...]                                            # f32, already *1/T
        pos = jnp.sum(q * p_ref[...], axis=-1, keepdims=True)     # <q,p>/T, f32
        qs_ref[...] = q.astype(qs_ref.dtype)                      # bf16 MXU operand
        pos_ref[...] = pos
        if fold_positive:
            m_ref[...] = pos
            l_ref[...] = jnp.ones_like(pos)                       # exp(pos-pos)=1
        else:
            m_ref[...] = jnp.full_like(pos, _NEG_BIG)
            l_ref[...] = jnp.zeros_like(pos)

    # (q_tile, kv_tile) logits / T: contract the shared last (lane) dim of both
    # operands (no in-kernel transpose), bf16 in, f32 accumulate on the MXU.
    s = lax.dot_general(qs_ref[...], kv_ref[...],
                        dimension_numbers=(((1,), (1,)), ((), ())),
                        preferred_element_type=jnp.float32)
    if padded:
        s = s + bias_ref[...]     # single VPU add: 0 for real cols, -1e30 padded

    m_prev = m_ref[...]
    m_new = jnp.maximum(m_prev, jnp.max(s, axis=-1, keepdims=True))
    l_ref[...] = (l_ref[...] * jnp.exp(m_prev - m_new)
                  + jnp.sum(jnp.exp(s - m_new), axis=-1, keepdims=True))
    m_ref[...] = m_new

    @pl.when(j == pl.num_programs(1) - 1)
    def _finalize():
        # per-sample CE = logsumexp(all logits) - positive logit
        o_ref[...] = m_ref[...] + jnp.log(l_ref[...]) - pos_ref[...]


# --------------------------------------------------------------------------
# Wrapper
# --------------------------------------------------------------------------
def info_nce_pallas(query, positive_key, negative_keys=None,
                    temperature=0.1, reduction='mean', negative_mode='unpaired'):
    """Pallas implementation of InfoNCE.forward (negative_mode='unpaired' or None)."""
    if query.ndim != 2 or positive_key.ndim != 2:
        raise ValueError('<query> and <positive_key> must have 2 dimensions.')
    if query.shape[0] != positive_key.shape[0]:
        raise ValueError('<query> and <positive_key> must have the same number of samples.')
    if query.shape[-1] != positive_key.shape[-1]:
        raise ValueError('<query> and <positive_key> must have the same embedding size.')
    if negative_keys is not None:
        if negative_mode != 'unpaired':
            # TODO(synk): negative_mode='paired' ((N, M, D) per-sample negatives) not implemented.
            raise NotImplementedError("only negative_mode='unpaired' is implemented")
        if negative_keys.ndim != 2 or negative_keys.shape[-1] != query.shape[-1]:
            raise ValueError('<negative_keys> must be (M, D) with matching embedding size.')
        if negative_keys.shape[0] == 0:
            raise ValueError('<negative_keys> must contain at least one key.')
    if reduction not in ('mean', 'sum', 'none'):
        raise ValueError("reduction must be one of ['none', 'sum', 'mean']")

    n, d = query.shape
    if n == 0:
        raise ValueError('<query> must contain at least one sample.')
    d_pad = max(128, _round_up(d, 128))
    inv_temp = 1.0 / float(temperature)

    # Pre-normalize ONCE in the wrapper (O((N+M)*D)); query also pre-scaled by
    # 1/T so the kernel body is pure dot + online-LSE.
    qn = _l2_normalize(query) * inv_temp            # f32
    pn = _l2_normalize(positive_key)                # f32

    if negative_keys is not None:
        keys = _l2_normalize(negative_keys).astype(jnp.bfloat16)
        m = negative_keys.shape[0]
        fold_positive = True
    else:
        keys = pn.astype(jnp.bfloat16)              # cross-batch negatives
        m = n
        fold_positive = False

    vmem_limit = _vmem_limit_bytes()
    q_tile, kv_tile = _pick_tiles(n, m, d_pad, int(vmem_limit * 0.7))
    n_pad = _round_up(n, q_tile)
    m_pad = _round_up(m, kv_tile)
    padded_cols = (m_pad != m)

    def _pad2(x, rows, dtype):
        r, c = x.shape
        x = x.astype(dtype)
        if r == rows and c == d_pad:
            return x
        # Zero rows/cols: zeros don't change norms or dot products.
        return jnp.pad(x, ((0, rows - r), (0, d_pad - c)))

    q_in = _pad2(qn, n_pad, jnp.float32)
    p_in = _pad2(pn, n_pad, jnp.float32)
    kv_in = _pad2(keys, m_pad, jnp.bfloat16)
    # Additive column mask row: 0 for real keys, -1e30 for padded columns.
    bias = jnp.where(jnp.arange(m_pad)[None, :] < m, 0.0, _NEG_BIG).astype(jnp.float32)

    kernel = functools.partial(_infonce_kernel,
                               fold_positive=fold_positive, padded=padded_cols)

    per_sample = pl.pallas_call(
        kernel,
        out_shape=jax.ShapeDtypeStruct((n_pad, 1), jnp.float32),
        grid_spec=pltpu.PrefetchScalarGridSpec(
            num_scalar_prefetch=0,
            grid=(n_pad // q_tile, m_pad // kv_tile),
            in_specs=[
                pl.BlockSpec((q_tile, d_pad), lambda i, j: (i, 0)),   # q (f32, *1/T)
                pl.BlockSpec((q_tile, d_pad), lambda i, j: (i, 0)),   # positive (f32)
                pl.BlockSpec((kv_tile, d_pad), lambda i, j: (j, 0)),  # keys (bf16)
                pl.BlockSpec((1, kv_tile), lambda i, j: (0, j)),      # column-mask bias
            ],
            out_specs=pl.BlockSpec((q_tile, 1), lambda i, j: (i, 0)),
            scratch_shapes=[
                pltpu.VMEM((q_tile, d_pad), jnp.bfloat16),   # scaled-normalized q (bf16)
                pltpu.VMEM((q_tile, 1), jnp.float32),        # positive / diagonal logit
                pltpu.VMEM((q_tile, 1), jnp.float32),        # running max
                pltpu.VMEM((q_tile, 1), jnp.float32),        # running denominator
            ]),
        compiler_params=pltpu.CompilerParams(
            dimension_semantics=("parallel", "arbitrary"),
            vmem_limit_bytes=int(vmem_limit)),
    )(q_in, p_in, kv_in, bias)

    per_sample = per_sample[:n, 0]
    if reduction == 'mean':
        return jnp.mean(per_sample)
    if reduction == 'sum':
        return jnp.sum(per_sample)
    return per_sample  # 'none'


class InfoNCE:
    """Mirror of the PyTorch module; forward runs the Pallas kernel."""

    def __init__(self, temperature=0.1, reduction='mean', negative_mode='unpaired'):
        self.temperature = temperature
        self.reduction = reduction
        self.negative_mode = negative_mode

    def __call__(self, query, positive_key, negative_keys=None):
        return info_nce_pallas(query, positive_key, negative_keys,
                               temperature=self.temperature,
                               reduction=self.reduction,
                               negative_mode=self.negative_mode)


# --------------------------------------------------------------------------
# Pure-JAX f32 reference for sanity checking.
# --------------------------------------------------------------------------
def _l2n(x):
    nrm = jnp.sqrt(jnp.sum(x * x, axis=-1, keepdims=True))
    return x / jnp.maximum(nrm, _EPS)


def _reference(query, positive_key, negative_keys=None, temperature=0.1):
    qn, pn = _l2n(query), _l2n(positive_key)
    if negative_keys is not None:
        nkn = _l2n(negative_keys)
        pos = jnp.sum(qn * pn, axis=1, keepdims=True)
        neg = qn @ nkn.T
        logits = jnp.concatenate([pos, neg], axis=1) / temperature
        labels = jnp.zeros(logits.shape[0], dtype=jnp.int32)
    else:
        logits = (qn @ pn.T) / temperature
        labels = jnp.arange(logits.shape[0])
    logp = jax.nn.log_softmax(logits, axis=-1)
    return -jnp.mean(logp[jnp.arange(logits.shape[0]), labels])


if __name__ == "__main__":
    key = jax.random.PRNGKey(0)
    k1, k2, k3 = jax.random.split(key, 3)

    batch_size, num_negative, embedding_size = 8, 16, 32
    query = jax.random.normal(k1, (batch_size, embedding_size), jnp.float32)
    positive_key = jax.random.normal(k2, (batch_size, embedding_size), jnp.float32)
    negative_keys = jax.random.normal(k3, (num_negative, embedding_size), jnp.float32)

    loss_mod = InfoNCE(temperature=0.1, reduction='mean', negative_mode='unpaired')

    # bf16 MXU operands loosen tolerance slightly vs the pure-f32 reference.
    TOL = dict(atol=2e-2, rtol=2e-2)

    # Case 1: explicit unpaired negatives.
    out1 = jax.block_until_ready(loss_mod(query, positive_key, negative_keys))
    ref1 = _reference(query, positive_key, negative_keys)
    assert jnp.allclose(out1, ref1, **TOL), (out1, ref1)

    # Case 2: no explicit negatives (cross-batch negatives).
    out2 = jax.block_until_ready(loss_mod(query, positive_key))
    ref2 = _reference(query, positive_key)
    assert jnp.allclose(out2, ref2, **TOL), (out2, ref2)

    # Case 3: ragged sizes -> exercises row/column padding + additive bias mask.
    q3, p3, nk3 = query[:5], positive_key[:5], negative_keys[:13]
    out3 = jax.block_until_ready(loss_mod(q3, p3, nk3))
    ref3 = _reference(q3, p3, nk3)
    assert jnp.allclose(out3, ref3, **TOL), (out3, ref3)

    # Case 4: ragged, no negatives.
    out4 = jax.block_until_ready(loss_mod(q3, p3))
    ref4 = _reference(q3, p3)
    assert jnp.allclose(out4, ref4, **TOL), (out4, ref4)

    print("KERNEL_OK")
</pallas_src>

<mosaic_0001>
module attributes {stable_mosaic.version = 11 : i64} {
  func.func @_infonce_kernel(%arg0: i32, %arg1: i32, %arg2: memref<16x128xf32, #tpu.memory_space<vmem>>, %arg3: memref<16x128xf32, #tpu.memory_space<vmem>>, %arg4: memref<128x128xbf16, #tpu.memory_space<vmem>>, %arg5: memref<1x128xf32, #tpu.memory_space<vmem>>, %arg6: memref<16x1xf32, #tpu.memory_space<vmem>>, %arg7: memref<16x128xbf16, #tpu.memory_space<vmem>>, %arg8: memref<16x1xf32, #tpu.memory_space<vmem>>, %arg9: memref<16x1xf32, #tpu.memory_space<vmem>>, %arg10: memref<16x1xf32, #tpu.memory_space<vmem>>) attributes {dimension_semantics = [#tpu.dimension_semantics<parallel>, #tpu.dimension_semantics<arbitrary>], iteration_bounds = array<i64: 1, 1>, scalar_prefetch = 0 : i64, scratch_operands = 4 : i64, tpu.core_type = #tpu.core_type<tc>, window_params = [{transform_indices = @transform_0, window_bounds = array<i64: 16, 128>}, {transform_indices = @transform_1, window_bounds = array<i64: 16, 128>}, {transform_indices = @transform_2, window_bounds = array<i64: 128, 128>}, {transform_indices = @transform_3, window_bounds = array<i64: 1, 128>}, {transform_indices = @transform_4, window_bounds = array<i64: 16, 1>}]} {
    %c0_i32 = arith.constant 0 : i32
    %0 = arith.cmpi eq, %arg1, %c0_i32 : i32
    %1 = arith.extui %0 : i1 to i32
    %c0_i32_0 = arith.constant 0 : i32
    %2 = arith.cmpi ne, %1, %c0_i32_0 : i32
    scf.if %2 {
      %c0_18 = arith.constant 0 : index
      %c0_19 = arith.constant 0 : index
      %28 = vector.load %arg2[%c0_18, %c0_19] : memref<16x128xf32, #tpu.memory_space<vmem>>, vector<16x128xf32>
      %c0_20 = arith.constant 0 : index
      %c0_21 = arith.constant 0 : index
      %29 = vector.load %arg3[%c0_20, %c0_21] : memref<16x128xf32, #tpu.memory_space<vmem>>, vector<16x128xf32>
      %30 = arith.mulf %28, %29 : vector<16x128xf32>
      %cst_22 = arith.constant dense<0.000000e+00> : vector<16xf32>
      %31 = vector.multi_reduction <add>, %30, %cst_22 [1] : vector<16x128xf32> to vector<16xf32>
      %32 = vector.shape_cast %31 : vector<16xf32> to vector<16x1xf32>
      %33 = arith.truncf %28 : vector<16x128xf32> to vector<16x128xbf16>
      %c0_23 = arith.constant 0 : index
      %c0_24 = arith.constant 0 : index
      %34 = vector.load %arg7[%c0_23, %c0_24] : memref<16x128xbf16, #tpu.memory_space<vmem>>, vector<16x128xbf16>
      tpu.vector_store %arg7[%c0_23, %c0_24], %33 {strides = array<i32>} : memref<16x128xbf16, #tpu.memory_space<vmem>>, vector<16x128xbf16>,
      %c0_25 = arith.constant 0 : index
      %c0_26 = arith.constant 0 : index
      %35 = vector.load %arg8[%c0_25, %c0_26] : memref<16x1xf32, #tpu.memory_space<vmem>>, vector<16x1xf32>
      tpu.vector_store %arg8[%c0_25, %c0_26], %32 {strides = array<i32>} : memref<16x1xf32, #tpu.memory_space<vmem>>, vector<16x1xf32>,
      %c0_27 = arith.constant 0 : index
      %c0_28 = arith.constant 0 : index
      %36 = vector.load %arg9[%c0_27, %c0_28] : memref<16x1xf32, #tpu.memory_space<vmem>>, vector<16x1xf32>
      tpu.vector_store %arg9[%c0_27, %c0_28], %32 {strides = array<i32>} : memref<16x1xf32, #tpu.memory_space<vmem>>, vector<16x1xf32>,
      %cst_29 = arith.constant 1.000000e+00 : f32
      %37 = vector.broadcast %cst_29 : f32 to vector<16x1xf32>
      %c0_30 = arith.constant 0 : index
      %c0_31 = arith.constant 0 : index
      %38 = vector.load %arg10[%c0_30, %c0_31] : memref<16x1xf32, #tpu.memory_space<vmem>>, vector<16x1xf32>
      tpu.vector_store %arg10[%c0_30, %c0_31], %37 {strides = array<i32>} : memref<16x1xf32, #tpu.memory_space<vmem>>, vector<16x1xf32>,
    } else {
    }
    %c0 = arith.constant 0 : index
    %c0_1 = arith.constant 0 : index
    %3 = vector.load %arg7[%c0, %c0_1] : memref<16x128xbf16, #tpu.memory_space<vmem>>, vector<16x128xbf16>
    %c0_2 = arith.constant 0 : index
    %c0_3 = arith.constant 0 : index
    %4 = vector.load %arg4[%c0_2, %c0_3] : memref<128x128xbf16, #tpu.memory_space<vmem>>, vector<128x128xbf16>
    %cst = arith.constant dense<0.000000e+00> : vector<16x128xf32>
    %5 = tpu.matmul %3, %4, %cst {dimension_numbers = #tpu.dot_dimension_numbers<[1], [1], [0], [0], [0, 0, 1, 0], [], []>} : vector<16x128xbf16>, vector<128x128xbf16>, vector<16x128xf32> -> vector<16x128xf32>
    %c0_4 = arith.constant 0 : index
    %c0_5 = arith.constant 0 : index
    %6 = vector.load %arg5[%c0_4, %c0_5] : memref<1x128xf32, #tpu.memory_space<vmem>>, vector<1x128xf32>
    %7 = vector.broadcast %6 : vector<1x128xf32> to vector<16x128xf32>
    %8 = arith.addf %5, %7 : vector<16x128xf32>
    %c0_6 = arith.constant 0 : index
    %c0_7 = arith.constant 0 : index
    %9 = vector.load %arg9[%c0_6, %c0_7] : memref<16x1xf32, #tpu.memory_space<vmem>>, vector<16x1xf32>
    %cst_8 = arith.constant dense<0xFF800000> : vector<16xf32>
    %10 = vector.multi_reduction <maximumf>, %8, %cst_8 [1] : vector<16x128xf32> to vector<16xf32>
    %11 = vector.shape_cast %10 : vector<16xf32> to vector<16x1xf32>
    %12 = arith.maximumf %9, %11 : vector<16x1xf32>
    %c0_9 = arith.constant 0 : index
    %c0_10 = arith.constant 0 : index
    %13 = vector.load %arg10[%c0_9, %c0_10] : memref<16x1xf32, #tpu.memory_space<vmem>>, vector<16x1xf32>
    %14 = arith.subf %9, %12 : vector<16x1xf32>
    %15 = math.exp %14 : vector<16x1xf32>
    %16 = arith.mulf %13, %15 : vector<16x1xf32>
    %17 = vector.broadcast %12 : vector<16x1xf32> to vector<16x128xf32>
    %18 = arith.subf %8, %17 : vector<16x128xf32>
    %19 = math.exp %18 : vector<16x128xf32>
    %cst_11 = arith.constant dense<0.000000e+00> : vector<16xf32>
    %20 = vector.multi_reduction <add>, %19, %cst_11 [1] : vector<16x128xf32> to vector<16xf32>
    %21 = vector.shape_cast %20 : vector<16xf32> to vector<16x1xf32>
    %22 = arith.addf %16, %21 : vector<16x1xf32>
    %c0_12 = arith.constant 0 : index
    %c0_13 = arith.constant 0 : index
    %23 = vector.load %arg10[%c0_12, %c0_13] : memref<16x1xf32, #tpu.memory_space<vmem>>, vector<16x1xf32>
    tpu.vector_store %arg10[%c0_12, %c0_13], %22 {strides = array<i32>} : memref<16x1xf32, #tpu.memory_space<vmem>>, vector<16x1xf32>,
    %c0_14 = arith.constant 0 : index
    %c0_15 = arith.constant 0 : index
    %24 = vector.load %arg9[%c0_14, %c0_15] : memref<16x1xf32, #tpu.memory_space<vmem>>, vector<16x1xf32>
    tpu.vector_store %arg9[%c0_14, %c0_15], %12 {strides = array<i32>} : memref<16x1xf32, #tpu.memory_space<vmem>>, vector<16x1xf32>,
    %c0_i32_16 = arith.constant 0 : i32
    %25 = arith.cmpi eq, %arg1, %c0_i32_16 : i32
    %26 = arith.extui %25 : i1 to i32
    %c0_i32_17 = arith.constant 0 : i32
    %27 = arith.cmpi ne, %26, %c0_i32_17 : i32
    scf.if %27 {
      %c0_18 = arith.constant 0 : index
      %c0_19 = arith.constant 0 : index
      %28 = vector.load %arg9[%c0_18, %c0_19] : memref<16x1xf32, #tpu.memory_space<vmem>>, vector<16x1xf32>
      %c0_20 = arith.constant 0 : index
      %c0_21 = arith.constant 0 : index
      %29 = vector.load %arg10[%c0_20, %c0_21] : memref<16x1xf32, #tpu.memory_space<vmem>>, vector<16x1xf32>
      %30 = math.log %29 : vector<16x1xf32>
      %31 = arith.addf %28, %30 : vector<16x1xf32>
      %c0_22 = arith.constant 0 : index
      %c0_23 = arith.constant 0 : index
      %32 = vector.load %arg8[%c0_22, %c0_23] : memref<16x1xf32, #tpu.memory_space<vmem>>, vector<16x1xf32>
      %33 = arith.subf %31, %32 : vector<16x1xf32>
      %c0_24 = arith.constant 0 : index
      %c0_25 = arith.constant 0 : index
      %34 = vector.load %arg6[%c0_24, %c0_25] : memref<16x1xf32, #tpu.memory_space<vmem>>, vector<16x1xf32>
      tpu.vector_store %arg6[%c0_24, %c0_25], %33 {strides = array<i32>} : memref<16x1xf32, #tpu.memory_space<vmem>>, vector<16x1xf32>,
    } else {
    }
    return
  }
  func.func @transform_0(%arg0: i32, %arg1: i32) -> (i32, i32) {
    %c0_i32 = arith.constant 0 : i32
    %c0_i32_0 = arith.constant 0 : i32
    return %arg0, %c0_i32 : i32, i32
  }
  func.func @transform_1(%arg0: i32, %arg1: i32) -> (i32, i32) {
    %c0_i32 = arith.constant 0 : i32
    %c0_i32_0 = arith.constant 0 : i32
    return %arg0, %c0_i32 : i32, i32
  }
  func.func @transform_2(%arg0: i32, %arg1: i32) -> (i32, i32) {
    %c0_i32 = arith.constant 0 : i32
    %c0_i32_0 = arith.constant 0 : i32
    return %arg1, %c0_i32 : i32, i32
  }
  func.func @transform_3(%arg0: i32, %arg1: i32) -> (i32, i32) {
    %c0_i32 = arith.constant 0 : i32
    %c0_i32_0 = arith.constant 0 : i32
    return %c0_i32, %arg1 : i32, i32
  }
  func.func @transform_4(%arg0: i32, %arg1: i32) -> (i32, i32) {
    %c0_i32 = arith.constant 0 : i32
    %c0_i32_0 = arith.constant 0 : i32
    return %arg0, %c0_i32 : i32, i32
  }
}

</mosaic_0001>

<bundles_post_ra>
// kernel: tpu_custom_call.1
= control target key start
LH: loop header
LB: loop body
LE: loop exit
PB: predicated region body
PF: predicated region fallthrough
CT: control target
= control target key end

     0   :  { %9 = vsyncpa [#allocation7], 0  ;;  %s492_s0 = inlined_call_operand.hbm [shape: f32[16,128], index: 0, kind: input, shape index: {}]   ;;  %s493_s1 = inlined_call_operand.hbm [shape: f32[16,128], index: 1, kind: input, shape index: {}]   ;;  %s494_s2 = inlined_call_operand.hbm [shape: bf16[128,128], index: 2, kind: input, shape index: {}]   ;;  %s495_s3 = inlined_call_operand.vmem [shape: f32[1,128], index: 3, kind: input, shape index: {}]   ;;  %s496_s4 = inlined_call_operand.vmem [shape: f32[16,1], index: 4, kind: output, shape index: {}]  }
   0x1   :  { %10 = vsyncpa [#allocation9], 0  ;;  %s426_s15 = smov [#allocation8]   ;;  %s427_s17 = smov [#allocation6]  }
   0x2   :  { %s28_s16 = sshll.u32 %s426_s15, 4  ;;  %s16_s18 = sshll.u32 %s427_s17, 4  ;;  %s29_s16 = int_to_ptr.vmem [resolvable:$true] %s28_s16  ;;  %s17_s18 = int_to_ptr.vmem [resolvable:$true] %s16_s18 }
   0x3   :  { %s370_s19 = scalar_lea.vmem %s29_s16, 256  ;;  %p375_p1 = scmp.lt.s32.totalorder %s29_s16, %s29_s16 }
   0x4   :  { %p371_p0 = scmp.ne.s32.totalorder %s29_s16, %s370_s19  ;;  %p376_p2 = scmp.lt.s32.totalorder %s370_s19, %s370_s19 }
   0x6   :  { %p377_p3 = por %p376_p2, %p375_p1 }
   0x8   :  { %p378_p4 = pnand %p377_p3, %p371_p0 }
   0xa   :  { %381 = shalt.err (!%p378_p4)
}
   0xb   :  { %s428_s20 = smov 128   ;;  %s429_s21 = smov 8  }
   0xc   :  { %34 = dma.hbm_to_vmem [thread:$0]  %s493_s1, 256, %s29_s16, [#allocation9], %s428_s20, %s428_s20, %s429_s21  }
   0xd   :  { %s390_s24 = scalar_lea.vmem %s17_s18, 256  ;;  %p395_p6 = scmp.lt.s32.totalorder %s17_s18, %s17_s18 }
   0xe   :  { %p391_p5 = scmp.ne.s32.totalorder %s17_s18, %s390_s24  ;;  %p396_p7 = scmp.lt.s32.totalorder %s390_s24, %s390_s24 }
  0x10   :  { %p397_p8 = por %p396_p7, %p395_p6 }
  0x12   :  { %p398_p9 = pnand %p397_p8, %p391_p5 }
  0x14   :  { %401 = shalt.err (!%p398_p9)
}
  0x15   :  { %22 = dma.hbm_to_vmem [thread:$0]  %s492_s0, 256, %s17_s18, [#allocation7], %s428_s20, %s428_s20, %s429_s21  }
  0x16   :  { %s430_s27 = smov [#allocation10]  }
  0x17   :  { %s40_s28 = sshll.u32 %s430_s27, 4  ;;  %s41_s28 = int_to_ptr.vmem [resolvable:$true] %s40_s28 }
  0x18   :  { %s410_s29 = scalar_lea.vmem %s41_s28, 1024  ;;  %p415_p11 = scmp.lt.s32.totalorder %s41_s28, %s41_s28 }
  0x19   :  { %p411_p10 = scmp.ne.s32.totalorder %s41_s28, %s410_s29  ;;  %p416_p12 = scmp.lt.s32.totalorder %s410_s29, %s410_s29 }
  0x1b   :  { %p417_p13 = por %p416_p12, %p415_p11 }
  0x1d   :  { %p418_p0 = pnand %p417_p13, %p411_p10 }
  0x1f   :  { %421 = shalt.err (!%p418_p0)
}
  0x20   :  { %s431_s1 = smov 64   ;;  %s432_s30 = smov 4  }
  0x21   :  { %46 = dma.hbm_to_vmem [thread:$0]  %s494_s2, 1024, %s41_s28, [#allocation9], %s431_s1, %s431_s1, %s432_s30  }
  0x22   :  { %422 = dma.done.wait [#allocation7], 256  }
  0x23   :  { %423 = vsyncadd [#allocation7], 4294967040 }
  0x24   :  { %424 = dma.done.wait [#allocation9], 1280  }
  0x25   :  { %425 = vsyncadd [#allocation9], 4294966016  ;;  %v433_v0 = vmov 0.0   ;;  %vm434_vm0 = vmmov 0   ;;  %v341_v1 = vld [vmem:[#allocation10 + $0x38] sm:$0xff]   ;;  %v342_v2 = vld [vmem:[#allocation10 + $0x30] sm:$0xff]  }
  0x26   :  { %308 = vmatprep.subr.bf16.mxu0 %v433_v0  ;;  %324 = vmatprep.mubr.msk.bf16.mxu0 %vm434_vm0, %v433_v0  ;;  %v63_v3 = vld [vmem:[#allocation6] sm:$0xff]  ;;  %v64_v4 = vld [vmem:[#allocation6 + $0x8] sm:$0xff]  ;;  %v65_v5 = vld [vmem:[#allocation8] sm:$0xff]  ;;  %vm83_vm1 = vcmask 7168   ;;  %v435_v26 = vmov 0   ;;  %v436_v27 = vmov 1.0  }
  0x27   :  { %309 = vmatpush3.bf16.xpose.msra.mxu0 %v341_v1  ;;  %v297_v6 = vpack.c.bf16 %v64_v4, %v63_v3  ;;  %v67_v7 = vmul.f32 %v65_v5, %v63_v3  ;;  %v66_v8 = vld [vmem:[#allocation8 + $0x8] sm:$0xff]  ;;  %v343_v10 = vld [vmem:[#allocation10 + $0x28] sm:$0xff]   ;;  %v344_v11 = vld [vmem:[#allocation10 + $0x20] sm:$0xff]   ;;  %339 = vset.pattern.permute.xlu0 %v435_v26  ;;  %88 = vst.msk [vmem:[#allocation5] sm:$0xff] %vm83_vm1, %v436_v27 }
  0x28   :  { %310 = vmatprep.subr.bf16.mxu0 %v433_v0  ;;  %v68_v9 = vmul.f32 %v66_v8, %v64_v4  ;;  %v345_v12 = vld [vmem:[#allocation10 + $0x18] sm:$0xff]   ;;  %v346_v13 = vld [vmem:[#allocation10 + $0x10] sm:$0xff]   ;;  %v347_v14 = vld [vmem:[#allocation10 + $0x8] sm:$0xff]   ;;  %340 = vset.pattern.permute.xlu1 %v435_v26  ;;  %89 = vst.msk [vmem:[#allocation5 + $0x8] sm:$0xff] %vm83_vm1, %v436_v27 }
  0x29   :  { %298 = vst [vmem:[#allocation2] sm:$0xff] %v297_v6   ;;  %69 = vadd.xlane.f32.xlu0 %v67_v7  ;;  %v348_v15 = vld [vmem:[#allocation10] sm:$0xff]   ;;  %v282_v19 = vld [vmem:[%s495_s3] ss:$0 sm:$0xff] }
  0x2d   :  { %71 = vadd.xlane.f32.xlu0 %v68_v9 }
  0x2e   :  { %v218_v47 = vld [vmem:[#allocation5] sm:$0xff] }
  0x2f   :  { %311 = vmatpush3.bf16.xpose.msra.mxu0 %v342_v2  ;;  %v219_v51 = vld [vmem:[#allocation5 + $0x8] sm:$0xff] }
  0x30   :  { %312 = vmatprep.subr.bf16.mxu0 %v433_v0  ;;  %v349_v16 = vld [vmem:[#allocation2] sm:$0xff]  }
  0x37   :  { %313 = vmatpush3.bf16.xpose.msra.mxu0 %v343_v10 }
  0x38   :  { %314 = vmatprep.subr.bf16.mxu0 %v433_v0 }
  0x3f   :  { %315 = vmatpush3.bf16.xpose.msra.mxu0 %v344_v11 }
  0x40   :  { %316 = vmatprep.subr.bf16.mxu0 %v433_v0 }
  0x47   :  { %317 = vmatpush3.bf16.xpose.msra.mxu0 %v345_v12 }
  0x48   :  { %318 = vmatprep.subr.bf16.mxu0 %v433_v0 }
  0x4f   :  { %319 = vmatpush3.bf16.xpose.msra.mxu0 %v346_v13 }
  0x50   :  { %320 = vmatprep.subr.bf16.mxu0 %v433_v0 }
  0x57   :  { %321 = vmatpush3.bf16.xpose.msra.mxu0 %v347_v14 }
  0x58   :  { %322 = vmatprep.subr.bf16.mxu0 %v433_v0 }
  0x5f   :  { %323 = vmatpush3.bf16.xpose.msra.mxu0 %v348_v15 }
  0x66   :  { %325 = vmatmul.mubr.bf16.vlgmr.msra.gmra.mxu0 %v349_v16 }
  0xb2   :  { %v70_v17 = vpop.xlane.xlu0 %69 }
  0xb3   :  { %84 = vst.msk [vmem:[#allocation3] sm:$0xff] %vm83_vm1, %v70_v17  ;;  %86 = vst.msk [vmem:[#allocation4] sm:$0xff] %vm83_vm1, %v70_v17 }
  0xb6   :  { %v72_v18 = vpop.xlane.xlu0 %71 }
  0xb7   :  { %85 = vst.msk [vmem:[#allocation3 + $0x8] sm:$0xff] %vm83_vm1, %v72_v18  ;;  %87 = vst.msk [vmem:[#allocation4 + $0x8] sm:$0xff] %vm83_vm1, %v72_v18 }
  0xba   :  { %v210_v28 = vld [vmem:[#allocation4] sm:$0xff]  ;;  %v268_v63 = vld [vmem:[#allocation3] sm:$0xff] }
  0xbe   :  { %v211_v31 = vld [vmem:[#allocation4 + $0x8] sm:$0xff]  ;;  %v269_v4 = vld [vmem:[#allocation3 + $0x8] sm:$0xff] }
 0x126   :  { %v203_v20 = vpop.f32.mrf.mxu0 }
 0x127   :  { %v204_v21 = vadd.f32 %v282_v19, %v203_v20 }
 0x128   :  { %v326_v22 = vpop.f32.mrf.mxu0 }
 0x129   :  { %212 = vmax.xlane.f32.xlu1 %v204_v21 }
 0x12a   :  { %v206_v23 = vpop.f32.mrf.mxu0 }
 0x12b   :  { %v207_v24 = vadd.f32 %v282_v19, %v206_v23 }
 0x12c   :  { %v327_v25 = vpop.f32.mrf.mxu0 }
 0x12d   :  { %214 = vmax.xlane.f32.xlu1 %v207_v24 }
 0x1b2   :  { %v213_v29 = vpop.xlane.xlu1 %212 }
 0x1b3   :  { %v216_v30 = vmax.f32 %v210_v28, %v213_v29 }
 0x1b5   :  { %v220_v32 = vsub.f32 %v210_v28, %v216_v30  ;;  %253 = vst.msk [vmem:[#allocation4] sm:$0xff] %vm83_vm1, %v216_v30  ;;  %230 = vperm.xlu0 %339, %v216_v30  }
 0x1b6   :  { %v215_v33 = vpop.xlane.xlu1 %214 }
 0x1b7   :  { %v217_v34 = vmax.f32 %v211_v31, %v215_v33  ;;  %v222_v44 = vmul.f32 1.442695, %v220_v32 }
 0x1b9   :  { %v221_v35 = vsub.f32 %v211_v31, %v217_v34  ;;  %254 = vst.msk [vmem:[#allocation4 + $0x8] sm:$0xff] %vm83_vm1, %v217_v34  ;;  %235 = vperm.xlu1 %340, %v217_v34  }
 0x1bb   :  { %v224_v45 = vmul.f32 1.442695, %v221_v35 }
 0x1bc   :  { %v258_v60 = vld [vmem:[#allocation4] sm:$0xff] }
 0x1c0   :  { %v259_v2 = vld [vmem:[#allocation4 + $0x8] sm:$0xff] }
 0x230   :  { %v231_v36 = vpop.permute.xlu0 %230 }
 0x231   :  { %v238_v37 = vsub.f32 %v204_v21, %v231_v36 }
 0x233   :  { %v240_v38 = vmul.f32 1.442695, %v238_v37 }
 0x234   :  { %v236_v39 = vpop.permute.xlu1 %235 }
 0x235   :  { %350 = vpow2.f32 %v240_v38  ;;  %v239_v40 = vsub.f32 %v207_v24, %v236_v39 }
 0x237   :  { %v242_v41 = vmul.f32 1.442695, %v239_v40 }
 0x239   :  { %352 = vpow2.f32 %v242_v41 }
 0x23a   :  { %354 = vpow2.f32 %v222_v44 }
 0x23b   :  { %356 = vpow2.f32 %v224_v45 }
 0x242   :  { %v351_v42 = vpop.eup %350 }
 0x243   :  { %244 = vadd.xlane.f32.xlu1 %v351_v42 }
 0x246   :  { %v353_v43 = vpop.eup %352 }
 0x247   :  { %246 = vadd.xlane.f32.xlu0 %v353_v43  ;;  %v355_v46 = vpop.eup %354 }
 0x248   :  { %v226_v48 = vmul.f32 %v355_v46, %v218_v47  ;;  %v357_v49 = vpop.eup %356 }
 0x249   :  { %v227_v53 = vmul.f32 %v357_v49, %v219_v51 }
 0x2cc   :  { %v245_v50 = vpop.xlane.xlu1 %244 }
 0x2cd   :  { %v248_v52 = vadd.f32 %v245_v50, %v226_v48 }
 0x2cf   :  { %251 = vst.msk [vmem:[#allocation5] sm:$0xff] %vm83_vm1, %v248_v52 }
 0x2d0   :  { %v247_v54 = vpop.xlane.xlu0 %246 }
 0x2d1   :  { %v249_v55 = vadd.f32 %v247_v54, %v227_v53 }
 0x2d3   :  { %252 = vst.msk [vmem:[#allocation5 + $0x8] sm:$0xff] %vm83_vm1, %v249_v55 }
 0x2d6   :  { %v260_v56 = vld [vmem:[#allocation5] sm:$0xff] }
 0x2d7   :  { %358 = vlog2.f32 %v260_v56 }
 0x2da   :  { %v261_v57 = vld [vmem:[#allocation5 + $0x8] sm:$0xff] }
 0x2db   :  { %360 = vlog2.f32 %v261_v57 }
 0x2e4   :  { %v359_v58 = vpop.eup %358 }
 0x2e5   :  { %v263_v59 = vmul.f32 0.6931472, %v359_v58 }
 0x2e7   :  { %v266_v61 = vadd.f32 %v263_v59, %v258_v60 }
 0x2e8   :  { %v361_v62 = vpop.eup %360 }
 0x2e9   :  { %v270_v0 = vsub.f32 %v266_v61, %v268_v63  ;;  %v265_v1 = vmul.f32 0.6931472, %v361_v62 }
 0x2eb   :  { %272 = vst.msk [vmem:[%s496_s4] sm:$0xff] %vm83_vm1, %v270_v0  ;;  %v267_v3 = vadd.f32 %v265_v1, %v259_v2 }
 0x2ed   :  { %v271_v5 = vsub.f32 %v267_v3, %v269_v4 }
 0x2ef   :  { %273 = vst.msk [vmem:[%s496_s4 + $0x8] sm:$0xff] %vm83_vm1, %v271_v5 }
 0x2f0   :  { %278 = vsyncpa [#allocation7], 1 }
 0x2f1   :  { %279 = vsyncpa [#allocation9], 1 }

</bundles_post_ra>
